<compile_context>
chip_gen: v7x
topology: tpu7x:2x2x1
jax: 0.10.0
libtpu: 0.0.40
codegen_flags: <defaults>
</compile_context>

<pallas_src>
import functools

import jax
import jax.numpy as jnp
from jax.experimental import pallas as pl
from jax.experimental.pallas import tpu as pltpu


def _int_pow(x, n):
    # n >= 2 trace-time Python int: exponentiation by squaring on the VPU,
    # avoiding per-element exp/log pow on the single EUP.
    acc = None
    base = x
    while n:
        if n & 1:
            acc = base if acc is None else acc * base
        n >>= 1
        if n:
            base = base * base
    return acc


def _pairwise_distance_kernel(x1_ref, x2_ref, o_ref, *, p, eps):
    # Elementwise + row reduction + root all live in the kernel.
    x1 = x1_ref[...].astype(jnp.float32)
    x2 = x2_ref[...].astype(jnp.float32)
    diff = jnp.abs(x1 - x2) + eps           # (tile_n, D), strictly >= eps > 0

    # p is a trace-time constant: specialize so the per-element work stays on
    # the VPU; the only transcendentals are per-row (sqrt / 1/p root).
    if p == 2.0:
        dist = jnp.sqrt(jnp.sum(diff * diff, axis=-1))
    elif p == 1.0:
        dist = jnp.sum(diff, axis=-1)
    elif p > 0 and float(p).is_integer():
        dist = jnp.sum(_int_pow(diff, int(p)), axis=-1) ** (1.0 / p)
    else:
        dist = jnp.sum(diff ** p, axis=-1) ** (1.0 / p)

    # Lane-dense store: (tile_n,) -> (1, tile_n) row slab (unmasked vst).
    # TODO(synk): if a v7x bundle dump shows the XLU (cross-lane sum + this
    # sublane->lane repack) binding above the HBM roofline, move the row sum
    # onto the idle MXU (diff2 @ ones) or restructure the output layout.
    o_ref[...] = dist.reshape(1, -1).astype(o_ref.dtype)


def _vmem_capacity_bytes():
    try:
        info = pltpu.get_tpu_info()
        cap = getattr(info, "vmem_capacity_bytes", None)
        if cap:
            return int(cap)
    except Exception:
        pass
    # Explicit per-chip fallback: v5e/v6e have 128 MiB VMEM per TC, v7x 64 MiB.
    try:
        kind = jax.devices()[0].device_kind.lower()
    except Exception:
        kind = ""
    if "v7" in kind:
        return 64 * 1024 * 1024
    return 128 * 1024 * 1024


def _pick_tile_n(n, d, itemsize, vmem_limit_bytes):
    # Per-row VMEM footprint:
    #   2 inputs x 2 pipeline buffers of (tile_n, d) in the input dtype
    # + ~3 f32 (tile_n, d) intermediates (upcasts / diff / diff^2) the body may
    #   materialize. Counting them keeps enlarged tiles safe on v7x (64 MiB).
    per_row = 4 * d * itemsize + 3 * d * 4
    budget = (vmem_limit_bytes * 7) // 10
    tile_n = budget // max(1, per_row)
    tile_n = (tile_n // 128) * 128
    tile_n = max(128, min(tile_n, 16384))

    n_ceil = ((n + 127) // 128) * 128
    tile_n = min(tile_n, n_ceil)

    # Keep >= 2 (up to 4) grid steps when there are enough rows so the
    # "parallel" N axis shards across both v7x TensorCores and the pipeline
    # has work to overlap. Large N already yields many steps from the VMEM cap.
    desired_splits = min(4, n_ceil // 128)
    if desired_splits >= 2:
        tile_cap = max(128, ((n_ceil // desired_splits) // 128) * 128)
        tile_n = min(tile_n, tile_cap)
    return tile_n
    # TODO(synk): for very large D where a single (128, D) tile no longer fits
    # VMEM, add a second "arbitrary" grid axis over D with a VMEM accumulator
    # (pl.when init/finalize) instead of shrinking tile_n.


def pairwise_distance(x1, x2, p=2.0, eps=1e-6):
    assert x1.shape == x2.shape and x1.ndim == 2
    N, D = x1.shape
    itemsize = jnp.dtype(x1.dtype).itemsize

    # Scoped VMEM limit: default scoped limits (16/32 MiB) are below physical;
    # raise it, but stay well under physical capacity.
    vmem_cap = _vmem_capacity_bytes()
    vmem_limit = min((vmem_cap * 3) // 4, 96 * 1024 * 1024)

    tile_n = _pick_tile_n(N, D, itemsize, vmem_limit)
    grid_n = pl.cdiv(N, tile_n)
    n_pad = grid_n * tile_n  # only the (tiny) output is padded; inputs untouched

    kernel = functools.partial(_pairwise_distance_kernel, p=float(p), eps=float(eps))

    cost = pl.CostEstimate(
        flops=6 * N * D,
        transcendentals=0 if float(p) == 1.0 else N,
        bytes_accessed=2 * N * D * itemsize + N * itemsize,
    )

    out = pl.pallas_call(
        kernel,
        out_shape=jax.ShapeDtypeStruct((1, n_pad), x1.dtype),
        grid_spec=pltpu.PrefetchScalarGridSpec(
            num_scalar_prefetch=0,
            grid=(grid_n,),
            in_specs=[
                pl.BlockSpec((tile_n, D), lambda i: (i, 0)),
                pl.BlockSpec((tile_n, D), lambda i: (i, 0)),
            ],
            # Lane-dense output slab: (1, tile_n) per grid step.
            out_specs=pl.BlockSpec((1, tile_n), lambda i: (0, i)),
        ),
        compiler_params=pltpu.CompilerParams(
            dimension_semantics=("parallel",),
            vmem_limit_bytes=int(vmem_limit),
        ),
        cost_estimate=cost,
    )(x1, x2)

    # (1, n_pad) -> (N, 1): the garbage rows from the ragged final block live
    # only in the padded tail and are dropped here. Keep this slice.
    return out[0, :N].reshape(N, 1)


if __name__ == "__main__":
    key = jax.random.PRNGKey(0)
    k1, k2, k3, k4 = jax.random.split(key, 4)
    eps = 1e-6

    # Shapes from the module docstring example (100, 128); N=100 exercises the
    # ragged final block (no wrapper-side padding of the inputs).
    N, D = 100, 128
    x1 = jax.random.normal(k1, (N, D), dtype=jnp.float32)
    x2 = jax.random.normal(k2, (N, D), dtype=jnp.float32)

    # p = 2 (sqrt fast path)
    out2 = jax.block_until_ready(pairwise_distance(x1, x2, p=2.0, eps=eps))
    ref2 = jnp.sum((jnp.abs(x1 - x2) + eps) ** 2.0, axis=-1, keepdims=True) ** 0.5
    assert out2.shape == (N, 1)
    assert jnp.allclose(out2, ref2, rtol=1e-5, atol=1e-5)

    # p = 3 (integer-pow VPU path)
    out3 = jax.block_until_ready(pairwise_distance(x1, x2, p=3.0, eps=eps))
    ref3 = jnp.sum((jnp.abs(x1 - x2) + eps) ** 3.0, axis=-1, keepdims=True) ** (1.0 / 3.0)
    assert out3.shape == (N, 1)
    assert jnp.allclose(out3, ref3, rtol=1e-4, atol=1e-5)

    # p = 2.5 (generic pow path) on a multi-block ragged shape (grid_n > 1).
    N2, D2 = 300, 64
    y1 = jax.random.normal(k3, (N2, D2), dtype=jnp.float32)
    y2 = jax.random.normal(k4, (N2, D2), dtype=jnp.float32)
    out_g = jax.block_until_ready(pairwise_distance(y1, y2, p=2.5, eps=eps))
    ref_g = jnp.sum((jnp.abs(y1 - y2) + eps) ** 2.5, axis=-1, keepdims=True) ** (1.0 / 2.5)
    assert out_g.shape == (N2, 1)
    assert jnp.allclose(out_g, ref_g, rtol=1e-4, atol=1e-5)

    print("KERNEL_OK")
</pallas_src>

<mosaic_0001>
module attributes {stable_mosaic.version = 11 : i64} {
  func.func @_pairwise_distance_kernel(%arg0: i32, %arg1: memref<128x128xf32, #tpu.memory_space<vmem>>, %arg2: memref<128x128xf32, #tpu.memory_space<vmem>>, %arg3: memref<1x128xf32, #tpu.memory_space<vmem>>) attributes {dimension_semantics = [#tpu.dimension_semantics<parallel>], iteration_bounds = array<i64: 1>, scalar_prefetch = 0 : i64, scratch_operands = 0 : i64, tpu.core_type = #tpu.core_type<tc>, window_params = [{transform_indices = @transform_0, window_bounds = array<i64: 128, 128>}, {transform_indices = @transform_1, window_bounds = array<i64: 128, 128>}, {transform_indices = @transform_2, window_bounds = array<i64: 1, 128>}]} {
    %c0 = arith.constant 0 : index
    %c0_0 = arith.constant 0 : index
    %0 = vector.load %arg1[%c0, %c0_0] : memref<128x128xf32, #tpu.memory_space<vmem>>, vector<128x128xf32>
    %c0_1 = arith.constant 0 : index
    %c0_2 = arith.constant 0 : index
    %1 = vector.load %arg2[%c0_1, %c0_2] : memref<128x128xf32, #tpu.memory_space<vmem>>, vector<128x128xf32>
    %2 = arith.subf %0, %1 : vector<128x128xf32>
    %3 = math.absf %2 : vector<128x128xf32>
    %cst = arith.constant 9.99999997E-7 : f32
    %4 = vector.broadcast %cst : f32 to vector<128x128xf32>
    %5 = arith.addf %3, %4 : vector<128x128xf32>
    %6 = arith.mulf %5, %5 : vector<128x128xf32>
    %cst_3 = arith.constant dense<0.000000e+00> : vector<128xf32>
    %7 = vector.multi_reduction <add>, %6, %cst_3 [1] : vector<128x128xf32> to vector<128xf32>
    %8 = math.sqrt %7 : vector<128xf32>
    %9 = vector.shape_cast %8 : vector<128xf32> to vector<1x128xf32>
    %c0_4 = arith.constant 0 : index
    %c0_5 = arith.constant 0 : index
    %10 = vector.load %arg3[%c0_4, %c0_5] : memref<1x128xf32, #tpu.memory_space<vmem>>, vector<1x128xf32>
    tpu.vector_store %arg3[%c0_4, %c0_5], %9 {strides = array<i32>} : memref<1x128xf32, #tpu.memory_space<vmem>>, vector<1x128xf32>,
    return
  }
  func.func @transform_0(%arg0: i32) -> (i32, i32) {
    %c0_i32 = arith.constant 0 : i32
    %c0_i32_0 = arith.constant 0 : i32
    return %arg0, %c0_i32 : i32, i32
  }
  func.func @transform_1(%arg0: i32) -> (i32, i32) {
    %c0_i32 = arith.constant 0 : i32
    %c0_i32_0 = arith.constant 0 : i32
    return %arg0, %c0_i32 : i32, i32
  }
  func.func @transform_2(%arg0: i32) -> (i32, i32) {
    %c0_i32 = arith.constant 0 : i32
    %c0_i32_0 = arith.constant 0 : i32
    return %c0_i32, %arg0 : i32, i32
  }
}

</mosaic_0001>

<bundles_post_ra>
// kernel: tpu_custom_call.1
= control target key start
LH: loop header
LB: loop body
LE: loop exit
PB: predicated region body
PF: predicated region fallthrough
CT: control target
= control target key end

     0   :  { %7 = vsyncpa [#allocation3], 0  ;;  %s858_s0 = inlined_call_operand.hbm [shape: f32[100,128], index: 0, kind: input, shape index: {}]   ;;  %s859_s1 = inlined_call_operand.hbm [shape: f32[100,128], index: 1, kind: input, shape index: {}]   ;;  %s860_s2 = inlined_call_operand.hbm [shape: f32[1,128], index: 2, kind: output, shape index: {}]  }
   0x1   :  { %8 = vsyncpa [#allocation6], 0 }
   0x2   :  { %9 = vsyncpa [#allocation4], 0 }
   0x3   :  { %14 = vsyncadd [#allocation3], 384  ;;  %s534_s9 = smov [#allocation2]   ;;  %s462_s13 = scalar_lea.hbm %s858_s0, 1664 }
   0x4   :  { %s15_s10 = sshll.u32 %s534_s9, 4  ;;  %p463_p0 = scmp.ne.s32.totalorder %s858_s0, %s462_s13  ;;  %s16_s10 = int_to_ptr.vmem [resolvable:$true] %s15_s10 }
   0x5   :  { %p466_p1 = scmp.lt.u32.totalorder %s462_s13, %s858_s0 }
   0x7   :  { %p468_p2 = pnand %p466_p1, %p463_p0 }
   0x9   :  { %471 = shalt.err (!%p468_p2)
}
   0xa   :  { %s472_s18 = scalar_lea.vmem %s16_s10, 1664  ;;  %s476_s19 = scalar_lea.vmem %s16_s10, 2048 }
   0xb   :  { %p473_p3 = scmp.ne.s32.totalorder %s16_s10, %s472_s18  ;;  %p477_p4 = scmp.lt.s32.totalorder %s16_s10, %s16_s10 }
   0xc   :  { %p478_p5 = scmp.lt.s32.totalorder %s476_s19, %s472_s18 }
   0xe   :  { %p479_p6 = por %p478_p5, %p477_p4 }
  0x10   :  { %p480_p7 = pnand %p479_p6, %p473_p3 }
  0x12   :  { %483 = shalt.err (!%p480_p7)
}
  0x13   :  { %s535_s20 = smov 128   ;;  %s536_s21 = smov 8  }
  0x14   :  { %21 = dma.hbm_to_vmem [thread:$0]  %s858_s0, 1664, %s16_s10, [#allocation3], %s535_s20, %s535_s20, %s536_s21  }
  0x15   :  { %26 = vsyncadd [#allocation6], 384  ;;  %s537_s24 = smov [#allocation5]   ;;  %s484_s28 = scalar_lea.hbm %s859_s1, 1664 }
  0x16   :  { %s27_s25 = sshll.u32 %s537_s24, 4  ;;  %p485_p8 = scmp.ne.s32.totalorder %s859_s1, %s484_s28  ;;  %s28_s25 = int_to_ptr.vmem [resolvable:$true] %s27_s25 }
  0x17   :  { %p488_p9 = scmp.lt.u32.totalorder %s484_s28, %s859_s1 }
  0x19   :  { %p490_p10 = pnand %p488_p9, %p485_p8 }
  0x1b   :  { %493 = shalt.err (!%p490_p10)
}
  0x1c   :  { %s494_s5 = scalar_lea.vmem %s28_s25, 1664  ;;  %s498_s0 = scalar_lea.vmem %s28_s25, 2048 }
  0x1d   :  { %p495_p11 = scmp.ne.s32.totalorder %s28_s25, %s494_s5  ;;  %p499_p12 = scmp.lt.s32.totalorder %s28_s25, %s28_s25 }
  0x1e   :  { %p500_p13 = scmp.lt.s32.totalorder %s498_s0, %s494_s5 }
  0x20   :  { %p501_p0 = por %p500_p13, %p499_p12 }
  0x22   :  { %p502_p1 = pnand %p501_p0, %p495_p11 }
  0x24   :  { %505 = shalt.err (!%p502_p1)
}
  0x25   :  { %33 = dma.hbm_to_vmem [thread:$0]  %s859_s1, 1664, %s28_s25, [#allocation6], %s535_s20, %s535_s20, %s536_s21  }
  0x26   :  { %528 = dma.done.wait [#allocation3], 2048  }
  0x27   :  { %529 = vsyncadd [#allocation3], 4294965248 }
  0x28   :  { %530 = dma.done.wait [#allocation6], 2048  }
  0x29   :  { %531 = vsyncadd [#allocation6], 4294965248  ;;  %v42_v0 = vld [vmem:[#allocation2 + $0x10] sm:$0xff]  ;;  %v40_v2 = vld [vmem:[#allocation2] sm:$0xff]  ;;  %vm307_vm0 = vcmask 130112   ;;  %vm314_vm2 = vcmask 195712  }
  0x2a   :  { %v58_v1 = vld [vmem:[#allocation5 + $0x10] sm:$0xff]  ;;  %v56_v4 = vld [vmem:[#allocation5] sm:$0xff]  ;;  %v43_v5 = vld [vmem:[#allocation2 + $0x18] sm:$0xff]  ;;  %vm321_vm8 = vcmask 261312   ;;  %vm328_vm13 = vcmask 326912   ;;  %s538_s1 = smov [#allocation7]  }
  0x2b   :  { %v74_v3 = vsub.f32 %v42_v0, %v58_v1  ;;  %v59_v6 = vld [vmem:[#allocation5 + $0x18] sm:$0xff]  ;;  %v72_v7 = vsub.f32 %v40_v2, %v56_v4  ;;  %v41_v9 = vld [vmem:[#allocation2 + $0x8] sm:$0xff]  ;;  %v44_v15 = vld [vmem:[#allocation2 + $0x20] sm:$0xff]  ;;  %s415_s8 = sshll.u32 %s538_s1, 4  ;;  %s416_s8 = int_to_ptr.vmem [resolvable:$true] %s415_s8 }
  0x2c   :  { %v75_v8 = vsub.f32 %v43_v5, %v59_v6  ;;  %v57_v10 = vld [vmem:[#allocation5 + $0x8] sm:$0xff]  ;;  %v60_v16 = vld [vmem:[#allocation5 + $0x20] sm:$0xff]  ;;  %v47_v21 = vld [vmem:[#allocation2 + $0x38] sm:$0xff]  ;;  %s506_s9 = scalar_lea.vmem %s416_s8, 16  ;;  %s510_s10 = scalar_lea.vmem %s416_s8, 32 }
  0x2d   :  { %v45_v11 = vld [vmem:[#allocation2 + $0x28] sm:$0xff]  ;;  %v90_v12 = vand.u32 2147483647, %v74_v3  ;;  %v73_v13 = vsub.f32 %v41_v9, %v57_v10  ;;  %v88_v17 = vand.u32 2147483647, %v72_v7  ;;  %v76_v20 = vsub.f32 %v44_v15, %v60_v16  ;;  %v63_v22 = vld [vmem:[#allocation5 + $0x38] sm:$0xff]  ;;  %p507_p2 = scmp.ne.s32.totalorder %s416_s8, %s506_s9  ;;  %p511_p3 = scmp.lt.s32.totalorder %s416_s8, %s416_s8 }
  0x2e   :  { %v61_v14 = vld [vmem:[#allocation5 + $0x28] sm:$0xff]  ;;  %v91_v18 = vand.u32 2147483647, %v75_v8  ;;  %v79_v25 = vsub.f32 %v47_v21, %v63_v22  ;;  %v46_v26 = vld [vmem:[#allocation2 + $0x30] sm:$0xff]  ;;  %v48_v42 = vld [vmem:[#allocation2 + $0x40] sm:$0xff]  ;;  %p512_p4 = scmp.lt.s32.totalorder %s510_s10, %s506_s9 }
  0x2f   :  { %v77_v19 = vsub.f32 %v45_v11, %v61_v14  ;;  %v106_v23 = vadd.f32 1e-06, %v90_v12  ;;  %v89_v24 = vand.u32 2147483647, %v73_v13  ;;  %v62_v27 = vld [vmem:[#allocation5 + $0x30] sm:$0xff]  ;;  %v49_v36 = vld [vmem:[#allocation2 + $0x48] sm:$0xff] }
  0x30   :  { %v104_v28 = vadd.f32 1e-06, %v88_v17  ;;  %v107_v29 = vadd.f32 1e-06, %v91_v18  ;;  %v78_v31 = vsub.f32 %v46_v26, %v62_v27  ;;  %v92_v34 = vand.u32 2147483647, %v76_v20  ;;  %p513_p5 = por %p512_p4, %p511_p3 }
  0x31   :  { %v93_v30 = vand.u32 2147483647, %v77_v19  ;;  %v122_v32 = vmul.f32 %v106_v23, %v106_v23  ;;  %v105_v33 = vadd.f32 1e-06, %v89_v24  ;;  %v65_v37 = vld [vmem:[#allocation5 + $0x48] sm:$0xff]  ;;  %v64_v43 = vld [vmem:[#allocation5 + $0x40] sm:$0xff] }
  0x32   :  { %v120_v35 = vmul.f32 %v104_v28, %v104_v28  ;;  %v123_v38 = vmul.f32 %v107_v29, %v107_v29  ;;  %v95_v40 = vand.u32 2147483647, %v79_v25  ;;  %v81_v41 = vsub.f32 %v49_v36, %v65_v37  ;;  %v51_v48 = vld [vmem:[#allocation2 + $0x58] sm:$0xff]  ;;  %v50_v50 = vld [vmem:[#allocation2 + $0x50] sm:$0xff]  ;;  %v53_v60 = vld [vmem:[#allocation2 + $0x68] sm:$0xff]  ;;  %p514_p6 = pnand %p513_p5, %p507_p2 }
  0x33   :  { %140 = vadd.xlane.f32.xlu1 %v122_v32  ;;  %v109_v39 = vadd.f32 1e-06, %v93_v30  ;;  %v121_v44 = vmul.f32 %v105_v33, %v105_v33  ;;  %v108_v45 = vadd.f32 1e-06, %v92_v34  ;;  %v94_v46 = vand.u32 2147483647, %v78_v31 }
  0x34   :  { %136 = vadd.xlane.f32.xlu0 %v120_v35  ;;  %v80_v47 = vsub.f32 %v48_v42, %v64_v43  ;;  %v67_v49 = vld [vmem:[#allocation5 + $0x58] sm:$0xff]  ;;  %v66_v51 = vld [vmem:[#allocation5 + $0x50] sm:$0xff]  ;;  %v111_v53 = vadd.f32 1e-06, %v95_v40  ;;  %v97_v54 = vand.u32 2147483647, %v81_v41  ;;  %v296_v32 = vlaneseq }
  0x35   :  { %v125_v52 = vmul.f32 %v109_v39, %v109_v39  ;;  %v83_v55 = vsub.f32 %v51_v48, %v67_v49  ;;  %v124_v56 = vmul.f32 %v108_v45, %v108_v45  ;;  %v110_v57 = vadd.f32 1e-06, %v94_v46  ;;  %v69_v61 = vld [vmem:[#allocation5 + $0x68] sm:$0xff]  ;;  %v52_v62 = vld [vmem:[#allocation2 + $0x60] sm:$0xff]  ;;  %v55_v8 = vld [vmem:[#allocation2 + $0x78] sm:$0xff] }
  0x36   :  { %v96_v58 = vand.u32 2147483647, %v80_v47  ;;  %v82_v59 = vsub.f32 %v50_v50, %v66_v51  ;;  %v68_v63 = vld [vmem:[#allocation5 + $0x60] sm:$0xff]  ;;  %v127_v0 = vmul.f32 %v111_v53, %v111_v53  ;;  %v113_v1 = vadd.f32 1e-06, %v97_v54  ;;  %v71_v9 = vld [vmem:[#allocation5 + $0x78] sm:$0xff] }
  0x37   :  { %142 = vadd.xlane.f32.xlu1 %v123_v38  ;;  %v99_v2 = vand.u32 2147483647, %v83_v55  ;;  %v85_v3 = vsub.f32 %v53_v60, %v69_v61  ;;  %v126_v4 = vmul.f32 %v110_v57, %v110_v57  ;;  %v84_v7 = vsub.f32 %v52_v62, %v68_v63  ;;  %v54_v10 = vld [vmem:[#allocation2 + $0x70] sm:$0xff] }
  0x38   :  { %138 = vadd.xlane.f32.xlu0 %v121_v44  ;;  %v112_v5 = vadd.f32 1e-06, %v96_v58  ;;  %v98_v6 = vand.u32 2147483647, %v82_v59  ;;  %v70_v11 = vld [vmem:[#allocation5 + $0x70] sm:$0xff]  ;;  %v129_v12 = vmul.f32 %v113_v1, %v113_v1  ;;  %v87_v15 = vsub.f32 %v55_v8, %v71_v9 }
  0x39   :  { %v115_v13 = vadd.f32 1e-06, %v99_v2  ;;  %v101_v14 = vand.u32 2147483647, %v85_v3  ;;  %v100_v18 = vand.u32 2147483647, %v84_v7  ;;  %v86_v19 = vsub.f32 %v54_v10, %v70_v11 }
  0x3a   :  { %v128_v16 = vmul.f32 %v112_v5, %v112_v5  ;;  %v114_v17 = vadd.f32 1e-06, %v98_v6  ;;  %v103_v22 = vand.u32 2147483647, %v87_v15  ;;  %v580_v34 = vand.u32 127, %v296_v32 }
  0x3b   :  { %146 = vadd.xlane.f32.xlu1 %v125_v52  ;;  %v131_v20 = vmul.f32 %v115_v13, %v115_v13  ;;  %v117_v21 = vadd.f32 1e-06, %v101_v14  ;;  %v116_v24 = vadd.f32 1e-06, %v100_v18  ;;  %v102_v25 = vand.u32 2147483647, %v86_v19 }
  0x3c   :  { %144 = vadd.xlane.f32.xlu0 %v124_v56  ;;  %v130_v23 = vmul.f32 %v114_v17, %v114_v17  ;;  %v119_v27 = vadd.f32 1e-06, %v103_v22  ;;  %v588_v37 = vshrl.u32 %v296_v32, 7  ;;  %v591_v38 = vadd.s32 4294967280, %v580_v34 }
  0x3d   :  { %v133_v26 = vmul.f32 %v117_v21, %v117_v21  ;;  %v132_v28 = vmul.f32 %v116_v24, %v116_v24  ;;  %v118_v29 = vadd.f32 1e-06, %v102_v25  ;;  %v594_v39 = vadd.s32 4294967272, %v580_v34 }
  0x3e   :  { %v135_v30 = vmul.f32 %v119_v27, %v119_v27  ;;  %v600_v41 = vadd.s32 4294967288, %v580_v34  ;;  %v604_v42 = vadd.s32 4294967256, %v580_v34  ;;  %v607_v43 = vadd.s32 4294967264, %v580_v34 }
  0x3f   :  { %150 = vadd.xlane.f32.xlu1 %v127_v0  ;;  %v134_v31 = vmul.f32 %v118_v29, %v118_v29  ;;  %v610_v44 = vadd.s32 4294967240, %v580_v34  ;;  %v613_v45 = vadd.s32 4294967248, %v580_v34  ;;  %v616_v46 = vadd.s32 4294967224, %v580_v34 }
  0x40   :  { %148 = vadd.xlane.f32.xlu0 %v126_v4  ;;  %v619_v47 = vadd.s32 4294967232, %v580_v34  ;;  %v624_v49 = vadd.s32 4294967208, %v580_v34  ;;  %v627_v50 = vadd.s32 4294967216, %v580_v34  ;;  %v312_v51 = vsub.s32 %v591_v38, %v588_v37 }
  0x41   :  { %v300_v52 = vsub.s32 %v580_v34, %v588_v37  ;;  %v319_v53 = vsub.s32 %v594_v39, %v588_v37  ;;  %v305_v55 = vsub.s32 %v600_v41, %v588_v37  ;;  %v333_v56 = vsub.s32 %v604_v42, %v588_v37 }
  0x42   :  { %v326_v57 = vsub.s32 %v607_v43, %v588_v37  ;;  %v347_v59 = vsub.s32 %v610_v44, %v588_v37  ;;  %v340_v60 = vsub.s32 %v613_v45, %v588_v37  ;;  %v361_v61 = vsub.s32 %v616_v46, %v588_v37 }
  0x43   :  { %154 = vadd.xlane.f32.xlu1 %v129_v12  ;;  %v354_v62 = vsub.s32 %v619_v47, %v588_v37  ;;  %v375_v2 = vsub.s32 %v624_v49, %v588_v37  ;;  %v368_v3 = vsub.s32 %v627_v50, %v588_v37  ;;  %v661_v4 = vadd.s32 4294967200, %v580_v34 }
  0x44   :  { %152 = vadd.xlane.f32.xlu0 %v128_v16  ;;  %v669_v7 = vadd.s32 4294967192, %v580_v34  ;;  %v393_v47 = vadd.s32 4294967184, %v580_v34 }
  0x47   :  { %158 = vadd.xlane.f32.xlu1 %v131_v20 }
  0x48   :  { %156 = vadd.xlane.f32.xlu0 %v130_v23 }
  0x4b   :  { %162 = vadd.xlane.f32.xlu1 %v133_v26 }
  0x4c   :  { %160 = vadd.xlane.f32.xlu0 %v132_v28 }
  0x4f   :  { %166 = vadd.xlane.f32.xlu1 %v135_v30 }
  0x50   :  { %164 = vadd.xlane.f32.xlu0 %v134_v31 }
  0xc0   :  { %v578_v33 = vpop.xlane.xlu1 %140 }
  0xc1   :  { %430 = vrsqrt.f32 %v578_v33  ;;  %v583_v35 = vpop.xlane.xlu0 %136  ;;  %vm184_vm1 = vcmp.eq.f32.partialorder %v578_v33, inf  ;;  %vm186_vm3 = vcmp.eq.f32.partialorder %v578_v33, 0.0  ;;  %v187_v8 = vand.u32 2147483648, %v578_v33 }
  0xc2   :  { %432 = vrsqrt.f32 %v583_v35  ;;  %vm170_vm4 = vcmp.eq.f32.partialorder %v583_v35, inf  ;;  %vm172_vm5 = vcmp.eq.f32.partialorder %v583_v35, 0.0  ;;  %v173_v11 = vand.u32 2147483648, %v583_v35 }
  0xc4   :  { %v586_v36 = vpop.xlane.xlu1 %142 }
  0xc5   :  { %434 = vrsqrt.f32 %v586_v36  ;;  %v597_v40 = vpop.xlane.xlu0 %138  ;;  %vm191_vm6 = vcmp.eq.f32.partialorder %v586_v36, inf  ;;  %vm193_vm7 = vcmp.eq.f32.partialorder %v586_v36, 0.0  ;;  %v194_v15 = vand.u32 2147483648, %v586_v36 }
  0xc6   :  { %436 = vrsqrt.f32 %v597_v40  ;;  %vm177_vm9 = vcmp.eq.f32.partialorder %v597_v40, inf  ;;  %vm179_vm10 = vcmp.eq.f32.partialorder %v597_v40, 0.0  ;;  %v180_v20 = vand.u32 2147483648, %v597_v40 }
  0xc8   :  { %v621_v48 = vpop.xlane.xlu1 %146 }
  0xc9   :  { %438 = vrsqrt.f32 %v621_v48  ;;  %v636_v54 = vpop.xlane.xlu0 %144  ;;  %vm205_vm11 = vcmp.eq.f32.partialorder %v621_v48, inf  ;;  %vm207_vm12 = vcmp.eq.f32.partialorder %v621_v48, 0.0  ;;  %v208_v28 = vand.u32 2147483648, %v621_v48 }
  0xca   :  { %440 = vrsqrt.f32 %v636_v54  ;;  %vm198_vm14 = vcmp.eq.f32.partialorder %v636_v54, inf  ;;  %v201_v41 = vand.u32 2147483648, %v636_v54  ;;  %vm200_vm15 = vcmp.eq.f32.partialorder %v636_v54, 0.0 }
  0xcb   :  { %v431_v58 = vpop.eup %430 }
  0xcc   :  { %v433_v63 = vpop.eup %432  ;;  %v183_v0 = vmul.f32 %v431_v58, %v578_v33  ;;  %v654_v1 = vpop.xlane.xlu1 %150 }
  0xcd   :  { %v169_v5 = vmul.f32 %v433_v63, %v583_v35  ;;  %442 = vrsqrt.f32 %v654_v1  ;;  %v666_v6 = vpop.xlane.xlu0 %148 }
  0xce   :  { %444 = vrsqrt.f32 %v666_v6  ;;  %v185_v13 = vsel %vm184_vm1, %v578_v33, %v183_v0  ;;  %vm219_vm1 = vcmp.eq.f32.partialorder %v654_v1, inf }
  0xcf   :  { %v435_v9 = vpop.eup %434  ;;  %v171_v10 = vsel %vm170_vm4, %v583_v35, %v169_v5  ;;  %v188_v22 = vsel %vm186_vm3, %v187_v8, %v185_v13  ;;  %vm335_vm3 = vcmask 392512   ;;  %vm342_vm4 = vcmask 458112  }
  0xd0   :  { %v437_v12 = vpop.eup %436  ;;  %v190_v14 = vmul.f32 %v435_v9, %v586_v36  ;;  %v685_v16 = vpop.xlane.xlu1 %154  ;;  %v174_v19 = vsel %vm172_vm5, %v173_v11, %v171_v10  ;;  %v313_v35 = vrot.slane %v188_v22, %v312_v51  ;;  %v222_v8 = vand.u32 2147483648, %v654_v1 }
  0xd1   :  { %v176_v17 = vmul.f32 %v437_v12, %v597_v40  ;;  %446 = vrsqrt.f32 %v685_v16  ;;  %v691_v18 = vpop.xlane.xlu0 %152  ;;  %v301_v30 = vrot.slane %v174_v19, %v300_v52  ;;  %v215_v12 = vand.u32 2147483648, %v666_v6 }
  0xd2   :  { %448 = vrsqrt.f32 %v691_v18  ;;  %v192_v23 = vsel %vm191_vm6, %v586_v36, %v190_v14  ;;  %vm214_vm5 = vcmp.eq.f32.partialorder %v666_v6, 0.0  ;;  %vm349_vm6 = vcmask 523712  }
  0xd3   :  { %v439_v21 = vpop.eup %438  ;;  %v178_v24 = vsel %vm177_vm9, %v597_v40, %v176_v17  ;;  %v195_v40 = vsel %vm193_vm7, %v194_v15, %v192_v23  ;;  %vm233_vm7 = vcmp.eq.f32.partialorder %v685_v16, inf  ;;  %vm356_vm9 = vcmask 589312  }
  0xd4   :  { %v441_v25 = vpop.eup %440  ;;  %v181_v26 = vsel %vm179_vm10, %v180_v20, %v178_v24  ;;  %v204_v27 = vmul.f32 %v439_v21, %v621_v48  ;;  %v706_v29 = vpop.xlane.xlu1 %158  ;;  %vm226_vm10 = vcmp.eq.f32.partialorder %v691_v18, inf  ;;  %v229_v21 = vand.u32 2147483648, %v691_v18 }
  0xd5   :  { %v306_v31 = vrot.slane %v181_v26, %v305_v55  ;;  %v197_v32 = vmul.f32 %v441_v25, %v636_v54  ;;  %450 = vrsqrt.f32 %v706_v29  ;;  %v713_v33 = vpop.xlane.xlu0 %156 }
  0xd6   :  { %452 = vrsqrt.f32 %v713_v33  ;;  %v206_v36 = vsel %vm205_vm11, %v621_v48, %v204_v27  ;;  %vm228_vm11 = vcmp.eq.f32.partialorder %v691_v18, 0.0  ;;  %v236_v27 = vand.u32 2147483648, %v685_v16 }
  0xd7   :  { %v443_v58 = vpop.eup %442  ;;  %v308_v52 = vsel %vm307_vm0, %v306_v31, %v301_v30  ;;  %v199_v55 = vsel %vm198_vm14, %v636_v54, %v197_v32  ;;  %v320_v54 = vrot.slane %v195_v40, %v319_v53  ;;  %vm221_vm0 = vcmp.eq.f32.partialorder %v654_v1, 0.0 }
  0xd8   :  { %v445_v63 = vpop.eup %444  ;;  %v315_v38 = vsel %vm314_vm2, %v313_v35, %v308_v52  ;;  %v202_v51 = vsel %vm200_vm15, %v201_v41, %v199_v55  ;;  %v218_v0 = vmul.f32 %v443_v58, %v654_v1  ;;  %v731_v5 = vpop.xlane.xlu1 %162  ;;  %vm212_vm2 = vcmp.eq.f32.partialorder %v666_v6, inf }
  0xd9   :  { %v211_v9 = vmul.f32 %v445_v63, %v666_v6  ;;  %v739_v10 = vpop.xlane.xlu0 %160  ;;  %v327_v11 = vrot.slane %v202_v51, %v326_v57  ;;  %454 = vrsqrt.f32 %v731_v5  ;;  %v209_v53 = vsel %vm207_vm12, %v208_v28, %v206_v36 }
  0xda   :  { %v322_v13 = vsel %vm321_vm8, %v320_v54, %v315_v38  ;;  %v220_v43 = vsel %vm219_vm1, %v654_v1, %v218_v0  ;;  %vm235_vm8 = vcmp.eq.f32.partialorder %v685_v16, 0.0  ;;  %456 = vrsqrt.f32 %v739_v10 }
  0xdb   :  { %v447_v39 = vpop.eup %446  ;;  %v213_v14 = vsel %vm212_vm2, %v666_v6, %v211_v9  ;;  %v334_v6 = vrot.slane %v209_v53, %v333_v56  ;;  %v329_v20 = vsel %vm328_vm13, %v327_v11, %v322_v13  ;;  %v223_v23 = vsel %vm221_vm0, %v222_v8, %v220_v43 }
  0xdc   :  { %v449_v15 = vpop.eup %448  ;;  %v216_v57 = vsel %vm214_vm5, %v215_v12, %v213_v14  ;;  %v232_v17 = vmul.f32 %v447_v39, %v685_v16  ;;  %v757_v19 = vpop.xlane.xlu1 %166  ;;  %vm363_vm12 = vcmask 654912   ;;  %vm370_vm13 = vcmask 720512  }
  0xdd   :  { %v225_v48 = vmul.f32 %v449_v15, %v691_v18  ;;  %v341_v24 = vrot.slane %v216_v57, %v340_v60  ;;  %458 = vrsqrt.f32 %v757_v19  ;;  %v776_v42 = vpop.xlane.xlu0 %164  ;;  %vm247_vm14 = vcmp.eq.f32.partialorder %v706_v29, inf }
  0xde   :  { %v234_v26 = vsel %vm233_vm7, %v685_v16, %v232_v17  ;;  %vm240_vm15 = vcmp.eq.f32.partialorder %v713_v33, inf  ;;  %vm242_vm1 = vcmp.eq.f32.partialorder %v713_v33, 0.0  ;;  %v348_v60 = vrot.slane %v223_v23, %v347_v59 }
  0xdf   :  { %v451_v22 = vpop.eup %450  ;;  %v227_v25 = vsel %vm226_vm10, %v691_v18, %v225_v48  ;;  %v336_v18 = vsel %vm335_vm3, %v334_v6, %v329_v20  ;;  %v243_v30 = vand.u32 2147483648, %v713_v33  ;;  %460 = vrsqrt.f32 %v776_v42 }
  0xe0   :  { %v453_v56 = vpop.eup %452  ;;  %v230_v1 = vsel %vm228_vm11, %v229_v21, %v227_v25  ;;  %v246_v28 = vmul.f32 %v451_v22, %v706_v29  ;;  %v343_v31 = vsel %vm342_vm4, %v341_v24, %v336_v18  ;;  %v237_v32 = vsel %vm235_vm8, %v236_v27, %v234_v26 }
  0xe1   :  { %v239_v45 = vmul.f32 %v453_v56, %v713_v33  ;;  %v355_v35 = vrot.slane %v230_v1, %v354_v62  ;;  %vm377_vm0 = vcmask 786112   ;;  %v382_v58 = vsub.s32 %v661_v4, %v588_v37 }
  0xe2   :  { %v248_v59 = vsel %vm247_vm14, %v706_v29, %v246_v28  ;;  %v389_v52 = vsub.s32 %v669_v7, %v588_v37  ;;  %v250_v16 = vand.u32 2147483648, %v706_v29  ;;  %v400_v62 = vadd.s32 4294967176, %v580_v34 }
  0xe3   :  { %v241_v40 = vsel %vm240_vm15, %v713_v33, %v239_v45  ;;  %v455_v44 = vpop.eup %454  ;;  %v362_v33 = vrot.slane %v237_v32, %v361_v61  ;;  %vm249_vm3 = vcmp.eq.f32.partialorder %v706_v29, 0.0  ;;  %v350_v63 = vsel %vm349_vm6, %v348_v60, %v343_v31 }
  0xe4   :  { %v244_v41 = vsel %vm242_vm1, %v243_v30, %v241_v40  ;;  %v260_v55 = vmul.f32 %v455_v44, %v731_v5  ;;  %vm384_vm4 = vcmask 851712   ;;  %v457_v4 = vpop.eup %456  ;;  %v251_v38 = vsel %vm249_vm3, %v250_v16, %v248_v59 }
  0xe5   :  { %v369_v7 = vrot.slane %v244_v41, %v368_v3  ;;  %vm261_vm2 = vcmp.eq.f32.partialorder %v731_v5, inf  ;;  %v357_v36 = vsel %vm356_vm9, %v355_v35, %v350_v63  ;;  %vm263_vm5 = vcmp.eq.f32.partialorder %v731_v5, 0.0 }
  0xe6   :  { %v262_v34 = vsel %vm261_vm2, %v731_v5, %v260_v55  ;;  %v264_v46 = vand.u32 2147483648, %v731_v5  ;;  %v253_v61 = vmul.f32 %v457_v4, %v739_v10  ;;  %vm254_vm6 = vcmp.eq.f32.partialorder %v739_v10, inf }
  0xe7   :  { %v459_v29 = vpop.eup %458  ;;  %vm256_vm7 = vcmp.eq.f32.partialorder %v739_v10, 0.0  ;;  %v257_v50 = vand.u32 2147483648, %v739_v10  ;;  %vm275_vm8 = vcmp.eq.f32.partialorder %v757_v19, inf  ;;  %v376_v3 = vrot.slane %v251_v38, %v375_v2 }
  0xe8   :  { %v255_v51 = vsel %vm254_vm6, %v739_v10, %v253_v61  ;;  %v274_v0 = vmul.f32 %v459_v29, %v757_v19  ;;  %v364_v5 = vsel %vm363_vm12, %v362_v33, %v357_v36  ;;  %v278_v8 = vand.u32 2147483648, %v757_v19 }
  0xe9   :  { %v258_v54 = vsel %vm256_vm7, %v257_v50, %v255_v51  ;;  %v265_v9 = vsel %vm263_vm5, %v264_v46, %v262_v34  ;;  %v371_v11 = vsel %vm370_vm13, %v369_v7, %v364_v5  ;;  %v461_v12 = vpop.eup %460  ;;  %vm277_vm9 = vcmp.eq.f32.partialorder %v757_v19, 0.0 }
  0xea   :  { %v276_v39 = vsel %vm275_vm8, %v757_v19, %v274_v0  ;;  %v383_v53 = vrot.slane %v258_v54, %v382_v58  ;;  %v403_v49 = vsub.s32 %v400_v62, %v588_v37  ;;  %v267_v2 = vmul.f32 %v461_v12, %v776_v42 }
  0xeb   :  { %v279_v10 = vsel %vm277_vm9, %v278_v8, %v276_v39  ;;  %v396_v13 = vsub.s32 %v393_v47, %v588_v37  ;;  %vm268_vm10 = vcmp.eq.f32.partialorder %v776_v42, inf  ;;  %v271_v14 = vand.u32 2147483648, %v776_v42 }
  0xec   :  { %v378_v15 = vsel %vm377_vm0, %v376_v3, %v371_v11  ;;  %v390_v43 = vrot.slane %v265_v9, %v389_v52  ;;  %v269_v57 = vsel %vm268_vm10, %v776_v42, %v267_v2  ;;  %vm270_vm11 = vcmp.eq.f32.partialorder %v776_v42, 0.0 }
  0xed   :  { %v385_v17 = vsel %vm384_vm4, %v383_v53, %v378_v15  ;;  %vm391_vm12 = vcmask 917312   ;;  %v272_v19 = vsel %vm270_vm11, %v271_v14, %v269_v57  ;;  %vm398_vm13 = vcmask 982912  }
  0xee   :  { %v404_v48 = vrot.slane %v279_v10, %v403_v49  ;;  %v397_v37 = vrot.slane %v272_v19, %v396_v13  ;;  %vm405_vm14 = vcmask 1048512   ;;  %v392_v6 = vsel %vm391_vm12, %v390_v43, %v385_v17 }
  0xf0   :  { %v399_v20 = vsel %vm398_vm13, %v397_v37, %v392_v6 }
  0xf1   :  { %v406_v21 = vsel %vm405_vm14, %v404_v48, %v399_v20 }
  0xf2   :  { %408 = vst [vmem:[#allocation7] sm:$0x1] %v406_v21 }
  0xf3   :  { %517 = shalt.err (!%p514_p6)
}
  0xf4   :  { %s518_s13 = scalar_lea.hbm %s860_s2, 16 }
  0xf5   :  { %p519_p7 = scmp.ne.s32.totalorder %s860_s2, %s518_s13  ;;  %p522_p8 = scmp.lt.u32.totalorder %s518_s13, %s860_s2 }
  0xf7   :  { %p524_p9 = pnand %p522_p8, %p519_p7 }
  0xf9   :  { %527 = shalt.err (!%p524_p9)
}
  0xfa   :  { %418 = dma.vmem_to_hbm [thread:$0]  %s416_s8, 16, %s860_s2, [#allocation4]  }
  0xfb   :  { %532 = dma.done.wait [#allocation4], 16  }
  0xfc   :  { %533 = vsyncadd [#allocation4], 4294967280 }
  0xfd   :  { %422 = vsyncpa [#allocation3], 1 }
  0xfe   :  { %423 = vsyncpa [#allocation6], 1 }
  0xff   :  { %424 = vsyncpa [#allocation4], 1 }

</bundles_post_ra>
